<compile_context>
chip_gen: v6e
topology: v6e:2x2x1
jax: 0.10.0
libtpu: 0.0.40
codegen_flags: <defaults>
</compile_context>

<pallas_src>
import jax
import jax.numpy as jnp
from jax.experimental import pallas as pl
from jax.experimental.pallas import tpu as pltpu


def _spatial_layout(n, max_lanes=512):
    """Factor n = S * L with L the largest multiple of 128 (<= max_lanes) dividing n."""
    lanes = None
    l = 128
    while l <= max_lanes:
        if n % l == 0:
            lanes = l
        l += 128
    if lanes is None:
        return 1, n          # fallback: one sublane row of full (non-128) width
    return n // lanes, lanes


def _choose_s_tile(s, lanes, target_bytes=1 << 20):
    """Largest multiple-of-8 divisor of s whose f32 tile (s_tile x lanes) stays <= target."""
    if s <= 8 or s % 8 != 0:
        return s             # block 2nd-to-last dim must be 8-divisible or the full dim
    best = 8
    t = 8
    while t <= s:
        if s % t == 0 and t * lanes * 4 <= target_bytes:
            best = t
        t += 8
    return best


def _dice_stats_kernel(x_ref, t_ref, o_ref, acc_ref):
    """Accumulate per-channel sums; write a lane-dense (8,128) stats block at the end.

    x_ref, t_ref : (S_tile, L) tile of one (batch, channel) row
    o_ref        : (8, 128)   rows 0..4 = [inter, sum_x, sum_t, sum_x2, sum_t2]
    acc_ref      : (8, L) f32 lane-vector partial sums (VMEM scratch)
    """
    b = pl.program_id(1)
    s = pl.program_id(2)

    @pl.when((b == 0) & (s == 0))
    def _init():
        acc_ref[...] = jnp.zeros_like(acc_ref)

    x = x_ref[...].astype(jnp.float32)
    t = t_ref[...].astype(jnp.float32)

    acc_ref[0:1, :] += jnp.sum(x * t, axis=0, keepdims=True)
    acc_ref[1:2, :] += jnp.sum(x, axis=0, keepdims=True)
    acc_ref[2:3, :] += jnp.sum(t, axis=0, keepdims=True)
    acc_ref[3:4, :] += jnp.sum(x * x, axis=0, keepdims=True)
    acc_ref[4:5, :] += jnp.sum(t * t, axis=0, keepdims=True)

    @pl.when((b == pl.num_programs(1) - 1) & (s == pl.num_programs(2) - 1))
    def _finalize():
        stats = jnp.sum(acc_ref[...], axis=1, keepdims=True)        # (8, 1)
        o_ref[...] = jnp.broadcast_to(stats, o_ref.shape)           # lane-dense store


def _dice_stats(x, t):
    """Per-channel [inter, sum_x, sum_t, sum_x2, sum_t2] for NCHW x/t -> (C, 5) f32."""
    B, C = x.shape[0], x.shape[1]
    n = 1
    for d in x.shape[2:]:
        n *= d
    S, L = _spatial_layout(n)
    s_tile = _choose_s_tile(S, L)
    num_s = S // s_tile

    # Free, contiguous views: no transpose, no extra HBM traffic.
    x3 = x.reshape(B * C, S, L)
    t3 = t.reshape(B * C, S, L)

    def in_map(c, b, s):
        return (b * C + c, s, 0)

    out = pl.pallas_call(
        _dice_stats_kernel,
        out_shape=jax.ShapeDtypeStruct((C, 8, 128), jnp.float32),
        grid=(C, B, num_s),
        in_specs=[
            pl.BlockSpec((None, s_tile, L), in_map),
            pl.BlockSpec((None, s_tile, L), in_map),
        ],
        out_specs=pl.BlockSpec((None, 8, 128), lambda c, b, s: (c, 0, 0)),
        scratch_shapes=[pltpu.VMEM((8, L), jnp.float32)],
        compiler_params=pltpu.CompilerParams(
            dimension_semantics=("parallel", "arbitrary", "arbitrary"),
            vmem_limit_bytes=32 * 1024 * 1024,
        ),
    )(x3, t3)
    return out[:, :5, 0]


@jax.jit
def edice_loss(inputs, target):
    """EDiceLoss.forward(inputs, target) with NCHW inputs."""
    C = inputs.shape[1]
    stats = _dice_stats(inputs, target)                 # (C, 5) f32
    inter = stats[:, 0]
    sx = stats[:, 1]
    st = stats[:, 2]
    sx2 = stats[:, 3]
    st2 = stats[:, 4]

    smooth = 1.0
    # Channel 0: loss mode -> 1 - dice (squared sums + smooth).
    loss_mode = 1.0 - (2.0 * inter + smooth) / (sx2 + st2 + smooth)
    # Channels >= 1: metric mode (raw dice, zero-target special case).
    metric_mode = jnp.where(
        st == 0.0,
        jnp.where(sx == 0.0, 1.0, 0.0),
        2.0 * inter / (sx + st),
    )
    per_channel = jnp.where(jnp.arange(C) == 0, loss_mode, metric_mode)
    return jnp.sum(per_channel) / C


def _reference(inputs, target):
    """Pure-JAX reference mirroring the PyTorch code path exactly."""
    B, C = inputs.shape[0], inputs.shape[1]
    smooth = 1.0
    total = 0.0
    for i in range(C):
        x = inputs[:, i].astype(jnp.float32)
        t = target[:, i].astype(jnp.float32)
        inter = jnp.sum(x * t)
        if i == 0:  # metric_mode = 0 -> False
            dice = (2 * inter + smooth) / (jnp.sum(x * x) + jnp.sum(t * t) + smooth)
            total = total + (1.0 - dice)
        else:       # metric_mode truthy
            val = jnp.where(
                jnp.sum(t) == 0.0,
                jnp.where(jnp.sum(x) == 0.0, 1.0, 0.0),
                2 * inter / (jnp.sum(x) + jnp.sum(t)),
            )
            total = total + val
    return total / C


if __name__ == "__main__":
    key = jax.random.PRNGKey(0)
    k1, k2 = jax.random.split(key)
    B, C, H, W = 2, 4, 16, 16
    # Predictions: probabilities in (0, 1); targets: binary masks.
    inputs = jax.nn.sigmoid(jax.random.normal(k1, (B, C, H, W), dtype=jnp.float32))
    target = (jax.random.uniform(k2, (B, C, H, W)) > 0.5).astype(jnp.float32)

    out = jax.block_until_ready(edice_loss(inputs, target))
    ref = _reference(inputs, target)
    assert jnp.allclose(out, ref, rtol=1e-5, atol=1e-5), (out, ref)

    # Also exercise the non-128-divisible spatial fallback layout.
    k3, k4 = jax.random.split(k2)
    B2, C2, H2, W2 = 1, 3, 12, 20
    inputs2 = jax.nn.sigmoid(jax.random.normal(k3, (B2, C2, H2, W2), dtype=jnp.float32))
    target2 = (jax.random.uniform(k4, (B2, C2, H2, W2)) > 0.5).astype(jnp.float32)
    out2 = jax.block_until_ready(edice_loss(inputs2, target2))
    ref2 = _reference(inputs2, target2)
    assert jnp.allclose(out2, ref2, rtol=1e-5, atol=1e-5), (out2, ref2)

    print("KERNEL_OK")
</pallas_src>

<mosaic_0001>
module attributes {stable_mosaic.version = 11 : i64} {
  func.func @_dice_stats_kernel(%arg0: i32, %arg1: i32, %arg2: i32, %arg3: memref<1x1x256xf32, #tpu.memory_space<vmem>>, %arg4: memref<1x1x256xf32, #tpu.memory_space<vmem>>, %arg5: memref<1x8x128xf32, #tpu.memory_space<vmem>>, %arg6: memref<8x256xf32, #tpu.memory_space<vmem>>) attributes {dimension_semantics = [#tpu.dimension_semantics<parallel>, #tpu.dimension_semantics<arbitrary>, #tpu.dimension_semantics<arbitrary>], iteration_bounds = array<i64: 4, 2, 1>, scalar_prefetch = 0 : i64, scratch_operands = 1 : i64, tpu.core_type = #tpu.core_type<tc>, window_params = [{transform_indices = @transform_0, window_bounds = array<i64: 1, 1, 256>}, {transform_indices = @transform_1, window_bounds = array<i64: 1, 1, 256>}, {transform_indices = @transform_2, window_bounds = array<i64: 1, 8, 128>}]} {
    %c0_i32 = arith.constant 0 : i32
    %0 = arith.cmpi eq, %arg1, %c0_i32 : i32
    %c0_i32_0 = arith.constant 0 : i32
    %1 = arith.cmpi eq, %arg2, %c0_i32_0 : i32
    %2 = arith.andi %0, %1 : i1
    %3 = arith.extui %2 : i1 to i32
    %c0_i32_1 = arith.constant 0 : i32
    %4 = arith.cmpi ne, %3, %c0_i32_1 : i32
    scf.if %4 {
      %cst_29 = arith.constant 0.000000e+00 : f32
      %42 = vector.broadcast %cst_29 : f32 to vector<8x256xf32>
      %c0_30 = arith.constant 0 : index
      %c0_31 = arith.constant 0 : index
      %43 = vector.load %arg6[%c0_30, %c0_31] : memref<8x256xf32, #tpu.memory_space<vmem>>, vector<8x256xf32>
      tpu.vector_store %arg6[%c0_30, %c0_31], %42 {strides = array<i32>} : memref<8x256xf32, #tpu.memory_space<vmem>>, vector<8x256xf32>,
    } else {
    }
    %c0 = arith.constant 0 : index
    %c0_2 = arith.constant 0 : index
    %c0_3 = arith.constant 0 : index
    %5 = vector.load %arg3[%c0, %c0_2, %c0_3] : memref<1x1x256xf32, #tpu.memory_space<vmem>>, vector<1x1x256xf32>
    %6 = vector.shape_cast %5 : vector<1x1x256xf32> to vector<1x256xf32>
    %c0_4 = arith.constant 0 : index
    %c0_5 = arith.constant 0 : index
    %c0_6 = arith.constant 0 : index
    %7 = vector.load %arg4[%c0_4, %c0_5, %c0_6] : memref<1x1x256xf32, #tpu.memory_space<vmem>>, vector<1x1x256xf32>
    %8 = vector.shape_cast %7 : vector<1x1x256xf32> to vector<1x256xf32>
    %c0_7 = arith.constant 0 : index
    %c0_8 = arith.constant 0 : index
    %9 = vector.load %arg6[%c0_7, %c0_8] : memref<8x256xf32, #tpu.memory_space<vmem>>, vector<1x256xf32>
    %10 = arith.mulf %6, %8 : vector<1x256xf32>
    %cst = arith.constant dense<0.000000e+00> : vector<256xf32>
    %11 = vector.multi_reduction <add>, %10, %cst [0] : vector<1x256xf32> to vector<256xf32>
    %12 = vector.shape_cast %11 : vector<256xf32> to vector<1x256xf32>
    %13 = arith.addf %9, %12 : vector<1x256xf32>
    %c0_9 = arith.constant 0 : index
    %c0_10 = arith.constant 0 : index
    %14 = vector.load %arg6[%c0_9, %c0_10] : memref<8x256xf32, #tpu.memory_space<vmem>>, vector<1x256xf32>
    tpu.vector_store %arg6[%c0_9, %c0_10], %13 {strides = array<i32>} : memref<8x256xf32, #tpu.memory_space<vmem>>, vector<1x256xf32>,
    %c1 = arith.constant 1 : index
    %c0_11 = arith.constant 0 : index
    %15 = vector.load %arg6[%c1, %c0_11] : memref<8x256xf32, #tpu.memory_space<vmem>>, vector<1x256xf32>
    %cst_12 = arith.constant dense<0.000000e+00> : vector<256xf32>
    %16 = vector.multi_reduction <add>, %6, %cst_12 [0] : vector<1x256xf32> to vector<256xf32>
    %17 = vector.shape_cast %16 : vector<256xf32> to vector<1x256xf32>
    %18 = arith.addf %15, %17 : vector<1x256xf32>
    %c1_13 = arith.constant 1 : index
    %c0_14 = arith.constant 0 : index
    %19 = vector.load %arg6[%c1_13, %c0_14] : memref<8x256xf32, #tpu.memory_space<vmem>>, vector<1x256xf32>
    tpu.vector_store %arg6[%c1_13, %c0_14], %18 {strides = array<i32>} : memref<8x256xf32, #tpu.memory_space<vmem>>, vector<1x256xf32>,
    %c2 = arith.constant 2 : index
    %c0_15 = arith.constant 0 : index
    %20 = vector.load %arg6[%c2, %c0_15] : memref<8x256xf32, #tpu.memory_space<vmem>>, vector<1x256xf32>
    %cst_16 = arith.constant dense<0.000000e+00> : vector<256xf32>
    %21 = vector.multi_reduction <add>, %8, %cst_16 [0] : vector<1x256xf32> to vector<256xf32>
    %22 = vector.shape_cast %21 : vector<256xf32> to vector<1x256xf32>
    %23 = arith.addf %20, %22 : vector<1x256xf32>
    %c2_17 = arith.constant 2 : index
    %c0_18 = arith.constant 0 : index
    %24 = vector.load %arg6[%c2_17, %c0_18] : memref<8x256xf32, #tpu.memory_space<vmem>>, vector<1x256xf32>
    tpu.vector_store %arg6[%c2_17, %c0_18], %23 {strides = array<i32>} : memref<8x256xf32, #tpu.memory_space<vmem>>, vector<1x256xf32>,
    %c3 = arith.constant 3 : index
    %c0_19 = arith.constant 0 : index
    %25 = vector.load %arg6[%c3, %c0_19] : memref<8x256xf32, #tpu.memory_space<vmem>>, vector<1x256xf32>
    %26 = arith.mulf %6, %6 : vector<1x256xf32>
    %cst_20 = arith.constant dense<0.000000e+00> : vector<256xf32>
    %27 = vector.multi_reduction <add>, %26, %cst_20 [0] : vector<1x256xf32> to vector<256xf32>
    %28 = vector.shape_cast %27 : vector<256xf32> to vector<1x256xf32>
    %29 = arith.addf %25, %28 : vector<1x256xf32>
    %c3_21 = arith.constant 3 : index
    %c0_22 = arith.constant 0 : index
    %30 = vector.load %arg6[%c3_21, %c0_22] : memref<8x256xf32, #tpu.memory_space<vmem>>, vector<1x256xf32>
    tpu.vector_store %arg6[%c3_21, %c0_22], %29 {strides = array<i32>} : memref<8x256xf32, #tpu.memory_space<vmem>>, vector<1x256xf32>,
    %c4 = arith.constant 4 : index
    %c0_23 = arith.constant 0 : index
    %31 = vector.load %arg6[%c4, %c0_23] : memref<8x256xf32, #tpu.memory_space<vmem>>, vector<1x256xf32>
    %32 = arith.mulf %8, %8 : vector<1x256xf32>
    %cst_24 = arith.constant dense<0.000000e+00> : vector<256xf32>
    %33 = vector.multi_reduction <add>, %32, %cst_24 [0] : vector<1x256xf32> to vector<256xf32>
    %34 = vector.shape_cast %33 : vector<256xf32> to vector<1x256xf32>
    %35 = arith.addf %31, %34 : vector<1x256xf32>
    %c4_25 = arith.constant 4 : index
    %c0_26 = arith.constant 0 : index
    %36 = vector.load %arg6[%c4_25, %c0_26] : memref<8x256xf32, #tpu.memory_space<vmem>>, vector<1x256xf32>
    tpu.vector_store %arg6[%c4_25, %c0_26], %35 {strides = array<i32>} : memref<8x256xf32, #tpu.memory_space<vmem>>, vector<1x256xf32>,
    %c1_i32 = arith.constant 1 : i32
    %37 = arith.cmpi eq, %arg1, %c1_i32 : i32
    %c0_i32_27 = arith.constant 0 : i32
    %38 = arith.cmpi eq, %arg2, %c0_i32_27 : i32
    %39 = arith.andi %37, %38 : i1
    %40 = arith.extui %39 : i1 to i32
    %c0_i32_28 = arith.constant 0 : i32
    %41 = arith.cmpi ne, %40, %c0_i32_28 : i32
    scf.if %41 {
      %c0_29 = arith.constant 0 : index
      %c0_30 = arith.constant 0 : index
      %42 = vector.load %arg6[%c0_29, %c0_30] : memref<8x256xf32, #tpu.memory_space<vmem>>, vector<8x256xf32>
      %cst_31 = arith.constant dense<0.000000e+00> : vector<8xf32>
      %43 = vector.multi_reduction <add>, %42, %cst_31 [1] : vector<8x256xf32> to vector<8xf32>
      %44 = vector.shape_cast %43 : vector<8xf32> to vector<8x1xf32>
      %45 = vector.shape_cast %44 : vector<8x1xf32> to vector<8x1xf32>
      %46 = vector.broadcast %45 : vector<8x1xf32> to vector<8x128xf32>
      %c0_32 = arith.constant 0 : index
      %c0_33 = arith.constant 0 : index
      %c0_34 = arith.constant 0 : index
      %47 = vector.load %arg5[%c0_32, %c0_33, %c0_34] : memref<1x8x128xf32, #tpu.memory_space<vmem>>, vector<1x8x128xf32>
      %48 = vector.shape_cast %47 : vector<1x8x128xf32> to vector<8x128xf32>
      %49 = vector.shape_cast %46 : vector<8x128xf32> to vector<1x8x128xf32>
      tpu.vector_store %arg5[%c0_32, %c0_33, %c0_34], %49 {strides = array<i32>} : memref<1x8x128xf32, #tpu.memory_space<vmem>>, vector<1x8x128xf32>,
    } else {
    }
    return
  }
  func.func @transform_0(%arg0: i32, %arg1: i32, %arg2: i32) -> (i32, i32, i32) {
    %c4_i32 = arith.constant 4 : i32
    %0 = arith.muli %arg1, %c4_i32 : i32
    %1 = arith.addi %0, %arg0 : i32
    %c0_i32 = arith.constant 0 : i32
    %c0_i32_0 = arith.constant 0 : i32
    return %1, %arg2, %c0_i32 : i32, i32, i32
  }
  func.func @transform_1(%arg0: i32, %arg1: i32, %arg2: i32) -> (i32, i32, i32) {
    %c4_i32 = arith.constant 4 : i32
    %0 = arith.muli %arg1, %c4_i32 : i32
    %1 = arith.addi %0, %arg0 : i32
    %c0_i32 = arith.constant 0 : i32
    %c0_i32_0 = arith.constant 0 : i32
    return %1, %arg2, %c0_i32 : i32, i32, i32
  }
  func.func @transform_2(%arg0: i32, %arg1: i32, %arg2: i32) -> (i32, i32, i32) {
    %c0_i32 = arith.constant 0 : i32
    %c0_i32_0 = arith.constant 0 : i32
    %c0_i32_1 = arith.constant 0 : i32
    return %arg0, %c0_i32, %c0_i32_0 : i32, i32, i32
  }
}

</mosaic_0001>

<bundles_post_ra>
// kernel: edice_loss.1
= control target key start
LH: loop header
LB: loop body
LE: loop exit
PB: predicated region body
PF: predicated region fallthrough
CT: control target
= control target key end

     0   :  { %s496_s9 = smov 0   ;;  %s498_s10 = smov 0   ;;  %s560_s0 = inlined_call_operand.vmem [shape: f32[8,1,256], index: 0, kind: input, shape index: {}]   ;;  %s561_s1 = inlined_call_operand.vmem [shape: f32[8,1,256], index: 1, kind: input, shape index: {}]   ;;  %s562_s2 = inlined_call_operand.vmem [shape: f32[4,8,128], index: 2, kind: output, shape index: {}]  }
   0x1   :  { %s500_s11 = smov 0   ;;  %s502_s12 = smov 0  }
   0x2   :  { %s504_s13 = smov 0  }
   0x3 LB: > { %s27_s14 = sadd.s32 1, %s470_s11  ;;  %s31_s15 = sadd.s32 1, %s474_s12  ;;  %s478_s13 = sphi %s504_s13, %s12_s13   ;;  %s474_s12 = sphi %s502_s12, %s566_s12   ;;  %s470_s11 = sphi %s500_s11, %s565_s11   ;;  %s466_s10 = sphi %s498_s10, %s564_s10   ;;  %s462_s9 = sphi %s496_s9, %s563_s9  }
   0x4   : > { %p29_p0 = scmp.ge.s32.totalorder %s27_s14, 2  ;;  %p387_p1 = scmp.ge.s32.totalorder %s478_s13, 1 }
   0x5   : > { %p167_p2 = scmp.lt.s32.totalorder %s478_s13, 9 }
   0x6   : > { %s568_s14 = smov (%p29_p0, %s27_s14), 0  ;;  %s570_s15 = smov (!%p29_p0, %s31_s15), %s474_s12 }
   0x7   : > { %p168_p3 = pnand %p387_p1, %p167_p2  ;;  %p33_p4 = scmp.ge.s32.totalorder %s570_s15, 4 }
   0x8   : > { %s388_s16 = sshll.u32 (!%p168_p3), %s462_s9, 2  ;;  %p227_p5 = scmp.lt.s32.totalorder (!%p168_p3), %s466_s10, 3 }
   0x9   : > { %s572_s15 = smov (%p33_p4, %s570_s15), 0  ;;  %171 = sbr.rel (%p168_p3) target bundleno = 177 (0xb1), region = 28 }
   0xa   : > { %s204_s17 = sadd.s32 (!%p168_p3), %s466_s10, %s388_s16  ;;  %p231_p6 = scmp.eq.s32.totalorder (!%p168_p3), %s462_s9, 0 }
   0xb   : > { %p205_p7 = scmp.lt.s32.totalorder (!%p168_p3), %s204_s17, 7 }
   0xe   : > { %s574_s10 = smov (!%p227_p5, %s466_s10), 3  ;;  %s576_s17 = smov (!%p205_p7, %s204_s17), 7  ;;  %v480_v0 = vmov (%p231_p6), 0.0  }
   0xf   : > { %s392_s18 = sshll.u32 %s574_s10, 3  ;;  %s389_s19 = sshll.u32 %s576_s17, 1  ;;  %237 = vst [vmem:[#allocation2] sm:$0xff] (%p231_p6), %v480_v0  ;;  %238 = vst [vmem:[#allocation2 + $0x8] sm:$0xff] (%p231_p6), %v480_v0 }
  0x10   : > { %s533_s22 = scalar_lea.vmem %s562_s2, %s392_s18  ;;  %s212_s25 = scalar_lea.vmem %s560_s0, %s389_s19 }
  0x11   : > { %s224_s28 = scalar_lea.vmem %s561_s1, %s389_s19  ;;  %236 = sbr.rel (!%p231_p6) target bundleno = 22 (0x16), region = 32 }
  0x16 PF: > { %v239_v1 = vld [vmem:[%s212_s25] sm:$0x3]  ;;  %v245_v3 = vlaneseq  ;;  %p277_p8 = scmp.eq.s32.totalorder %s462_s9, 1  ;;  %v258_v10 = vld [vmem:[#allocation2 + $0x2] ss:$8 sm:$0x3] }
  0x17   : > { %v240_v2 = vld [vmem:[%s224_s28] sm:$0x3]  ;;  %v265_v7 = vmul.f32 %v239_v1, %v239_v1  ;;  %v264_v13 = vld [vmem:[#allocation2 + $0x3] ss:$8 sm:$0x3] }
  0x18   : > { %v241_v4 = vld [vmem:[#allocation2] ss:$8 sm:$0x3]  ;;  %v242_v5 = vmul.f32 %v240_v2, %v239_v1  ;;  %v252_v6 = vld [vmem:[#allocation2 + $0x1] ss:$8 sm:$0x3]  ;;  %v272_v8 = vmul.f32 %v240_v2, %v240_v2  ;;  %v260_v12 = vadd.f32 %v258_v10, %v240_v2 }
  0x19   : > { %vm247_vm0 = vcmp.lt.s32.totalorder %v245_v3, 256  ;;  %v254_v9 = vadd.f32 %v252_v6, %v239_v1  ;;  %v271_v14 = vld [vmem:[#allocation2 + $0x4] ss:$8 sm:$0x3]  ;;  %v267_v15 = vadd.f32 %v265_v7, %v264_v13  ;;  %281 = sbr.rel (!%p277_p8) target bundleno = 177 (0xb1), region = 36 }
  0x1a   : > { %v244_v11 = vadd.f32 %v242_v5, %v241_v4  ;;  %v274_v16 = vadd.f32 %v272_v8, %v271_v14  ;;  %261 = vst.msk [vmem:[#allocation2 + $0x2] ss:$8 sm:$0x3] %vm247_vm0, %v260_v12 }
  0x1b   : > { %255 = vst.msk [vmem:[#allocation2 + $0x1] ss:$8 sm:$0x3] %vm247_vm0, %v254_v9  ;;  %268 = vst.msk [vmem:[#allocation2 + $0x3] ss:$8 sm:$0x3] %vm247_vm0, %v267_v15 }
  0x1c   : > { %249 = vst.msk [vmem:[#allocation2] ss:$8 sm:$0x3] %vm247_vm0, %v244_v11  ;;  %275 = vst.msk [vmem:[#allocation2 + $0x4] ss:$8 sm:$0x3] %vm247_vm0, %v274_v16 }
  0x23   : > { %v282_v17 = vld [vmem:[#allocation2] sm:$0xff]  ;;  %v283_v18 = vld [vmem:[#allocation2 + $0x8] sm:$0xff] }
  0x24   : > { %v284_v19 = vadd.f32 %v283_v18, %v282_v17 }
  0x26   : > { %285 = vadd.xlane.f32.xlu0 %v284_v19 }
  0xaf   : > { %v286_v20 = vpop.xlane.xlu0 %285 }
  0xb0   : > { %287 = vst [vmem:[%s533_s22] sm:$0xff] %v286_v20 }
  0xb1 PF: > { %s12_s13 = sadd.s32 1, %s478_s13   ;;  %s563_s9 = smov %s470_s11 }
  0xb2   : > { %p9_p9 = scmp.ge.s32.totalorder %s12_s13, 10   ;;  %s564_s10 = smov %s474_s12 }
  0xb3   : > { %s565_s11 = smov %s568_s14  ;;  %s566_s12 = smov %s572_s15 }
  0xb4   :  { %11 = sbr.rel (!%p9_p9) target bundleno = 3 (0x3), region = 73 }

</bundles_post_ra>
